<compile_context>
chip_gen: v7x
topology: tpu7x:2x2x1
jax: 0.10.0
libtpu: 0.0.40
codegen_flags: <defaults>
</compile_context>

<pallas_src>
from functools import partial

import jax
import jax.numpy as jnp
import numpy as np
from jax.experimental import pallas as pl
from jax.experimental.pallas import tpu as pltpu

EDGE_TILE = 512                      # edges per grid step (4 lane-widths)


def _round_up(x, m):
    return (x + m - 1) // m * m


def _vmem_limit_bytes():
    # Generation-aware scoped-VMEM cap (~51 MiB on v7x, ~102 MiB on v5e/v6e).
    try:
        return int(pltpu.get_tpu_info().vmem_capacity_bytes * 0.8)
    except Exception:
        return 48 * 1024 * 1024      # conservative fallback (fits v7x's 64 MiB)


def _pick_row_tile(n_pad):
    tm = 512 if n_pad % 512 == 0 else (256 if n_pad % 256 == 0 else 128)
    # >= 2 row tiles: keeps both v7x TensorCores busy and re-enables
    # input/output pipelining on small graphs.
    while n_pad // tm < 2 and tm > 8:
        tm //= 2
    return tm


# ---------------------------------------------------------------------------
# Kernel 0 (only when D_out < D_in): XW = X @ W, computed ONCE (hoisted out of
# the per-row-tile GCN kernel).
# ---------------------------------------------------------------------------
def _xw_kernel(x_ref, w_ref, o_ref):
    o_ref[...] = jnp.dot(x_ref[...], w_ref[...],
                         preferred_element_type=jnp.float32).astype(o_ref.dtype)


def _xw_matmul(x_p, w_p, *, n_pad, din_pad, dout_pad, tm):
    return pl.pallas_call(
        _xw_kernel,
        out_shape=jax.ShapeDtypeStruct((n_pad, dout_pad), jnp.bfloat16),
        grid=(n_pad // tm,),
        in_specs=[
            pl.BlockSpec((tm, din_pad), lambda i: (i, 0)),
            pl.BlockSpec((din_pad, dout_pad), lambda i: (0, 0),
                         pipeline_mode=pl.Buffered(1)),
        ],
        out_specs=pl.BlockSpec((tm, dout_pad), lambda i: (i, 0)),
        compiler_params=pltpu.CompilerParams(
            dimension_semantics=("parallel",),
            vmem_limit_bytes=_vmem_limit_bytes()),
        cost_estimate=pl.CostEstimate(
            flops=2 * n_pad * din_pad * dout_pad, transcendentals=0,
            bytes_accessed=x_p.size * 2 + w_p.size * 2 + n_pad * dout_pad * 2),
    )(x_p, w_p)


# ---------------------------------------------------------------------------
# Kernel 1: weighted-GCN layer, K-tiled.
#   acc (f32 scratch) += A[i, k] @ B[k]          (B = X or precomputed XW)
#   at k == last:  H[i] = (acc [@ W]) + b        (bf16 out)
# ---------------------------------------------------------------------------
def _gcn_kernel(a_ref, b_ref, *rest, apply_w):
    if apply_w:
        w_ref, bias_ref, h_ref, acc_ref = rest
    else:
        bias_ref, h_ref, acc_ref = rest
    k = pl.program_id(1)

    @pl.when(k == 0)
    def _():
        acc_ref[...] = jnp.zeros_like(acc_ref)

    acc_ref[...] += jnp.dot(a_ref[...], b_ref[...],
                            preferred_element_type=jnp.float32)

    @pl.when(k == pl.num_programs(1) - 1)
    def _():
        if apply_w:   # D_in <= D_out: contracted the N^2 term against D_in
            h = jnp.dot(acc_ref[...].astype(jnp.bfloat16), w_ref[...],
                        preferred_element_type=jnp.float32)
        else:         # B was XW (hoisted), acc is already A @ (XW)
            h = acc_ref[...]
        h_ref[...] = (h + bias_ref[...]).astype(h_ref.dtype)


def _gcn_layer(a_p, x_p, w_p, b_p, *, n_pad, din_pad, dout_pad, d_in, d_out):
    tm = _pick_row_tile(n_pad)
    # Contraction tile over the neighbour axis: VMEM independent of N.
    tk = 512 if n_pad % 512 == 0 else (256 if n_pad % 256 == 0 else 128)

    ax_first = d_in <= d_out
    if ax_first:
        b_feat, feat = x_p, din_pad
        flops = 2 * n_pad * n_pad * din_pad + 2 * n_pad * din_pad * dout_pad
    else:
        # Hoisted X@W: computed once, row-tile kernel is just A @ XW + b.
        b_feat = _xw_matmul(x_p, w_p, n_pad=n_pad, din_pad=din_pad,
                            dout_pad=dout_pad, tm=tm)
        feat = dout_pad
        flops = 2 * n_pad * n_pad * dout_pad

    in_specs = [
        pl.BlockSpec((tm, tk), lambda i, k: (i, k)),    # A tile (bf16)
        pl.BlockSpec((tk, feat), lambda i, k: (k, 0)),  # X or XW tile (bf16)
    ]
    operands = [a_p, b_feat]
    if ax_first:
        in_specs.append(pl.BlockSpec((din_pad, dout_pad), lambda i, k: (0, 0),
                                     pipeline_mode=pl.Buffered(1)))
        operands.append(w_p)
    in_specs.append(pl.BlockSpec((1, dout_pad), lambda i, k: (0, 0),
                                 pipeline_mode=pl.Buffered(1)))
    operands.append(b_p)

    bytes_accessed = (a_p.size * 2 + b_feat.size * 2
                      + (w_p.size * 2 if ax_first else 0)
                      + b_p.size * 4 + n_pad * dout_pad * 2)

    return pl.pallas_call(
        partial(_gcn_kernel, apply_w=ax_first),
        out_shape=jax.ShapeDtypeStruct((n_pad, dout_pad), jnp.bfloat16),
        grid=(n_pad // tm, n_pad // tk),
        in_specs=in_specs,
        out_specs=pl.BlockSpec((tm, dout_pad), lambda i, k: (i, 0)),
        scratch_shapes=[pltpu.VMEM((tm, feat), jnp.float32)],
        compiler_params=pltpu.CompilerParams(
            dimension_semantics=("parallel", "arbitrary"),
            vmem_limit_bytes=_vmem_limit_bytes()),
        cost_estimate=pl.CostEstimate(flops=flops, transcendentals=0,
                                      bytes_accessed=bytes_accessed),
    )(*operands)


# ---------------------------------------------------------------------------
# Kernel 2: edge head  score[e] = <H[src_e], H[dst_e]>
#   flat 1-D edge indices in SMEM (scalar prefetch); H resident in VMEM (bf16,
#   single buffer); gather fused with the product (one store per edge),
#   partially unrolled; 512 edges per grid step; lane-dense score store.
# ---------------------------------------------------------------------------
def _edge_head_kernel(src_ref, dst_ref, h_ref, out_ref, prod_ref):
    base = pl.multiple_of(pl.program_id(0) * EDGE_TILE, EDGE_TILE)

    def gather(i, carry):
        s = src_ref[base + i]
        d = dst_ref[base + i]
        # Fused gather + product: one vector store per edge, f32 VPU math.
        prod_ref[i, :] = (h_ref[s, :].astype(jnp.float32)
                          * h_ref[d, :].astype(jnp.float32))
        return carry

    jax.lax.fori_loop(0, EDGE_TILE, gather, 0, unroll=8)

    scores = jnp.sum(prod_ref[...], axis=-1)            # (EDGE_TILE,)
    out_ref[...] = scores.reshape(1, 1, EDGE_TILE)       # lane-dense store


def _edge_head(src_p, dst_p, h, *, n_pad, dout_pad, e_pad):
    n_tiles = e_pad // EDGE_TILE
    flops = 2 * e_pad * dout_pad
    bytes_accessed = h.size * 2 + (src_p.size + dst_p.size) * 4 + e_pad * 4
    return pl.pallas_call(
        _edge_head_kernel,
        out_shape=jax.ShapeDtypeStruct((n_tiles, 1, EDGE_TILE), jnp.float32),
        grid_spec=pltpu.PrefetchScalarGridSpec(
            num_scalar_prefetch=2,
            grid=(n_tiles,),
            in_specs=[pl.BlockSpec((n_pad, dout_pad), lambda t, s, d: (0, 0),
                                   pipeline_mode=pl.Buffered(1))],
            out_specs=pl.BlockSpec((1, 1, EDGE_TILE), lambda t, s, d: (t, 0, 0)),
            scratch_shapes=[pltpu.VMEM((EDGE_TILE, dout_pad), jnp.float32)]),
        compiler_params=pltpu.CompilerParams(
            dimension_semantics=("parallel",),
            vmem_limit_bytes=_vmem_limit_bytes()),
        cost_estimate=pl.CostEstimate(flops=flops, transcendentals=0,
                                      bytes_accessed=bytes_accessed),
    )(src_p, dst_p, h)


# ---------------------------------------------------------------------------
# Wrapper (glue in plain JAX: adjacency build, padding, unpadding)
# ---------------------------------------------------------------------------
def link_predictor(x, edge_index, edge_weight, edges, w, b):
    """x: (N, Din) f32; edge_index: (2, M) i32; edge_weight: (M,) f32;
    edges: (2, E) i32; w: (Din, Dout) f32; b: (Dout,) f32 -> (E,) f32."""
    n, d_in = x.shape
    d_out = w.shape[1]
    e = edges.shape[1]

    n_pad = _round_up(n, 128)
    din_pad = _round_up(d_in, 128)
    dout_pad = _round_up(d_out, 128)
    e_pad = _round_up(e, EDGE_TILE)

    # Dense weighted adjacency (messages src -> dst, aggregated at dst)
    # scattered directly into the padded buffer: single f32 materialization,
    # one cast to bf16 for the MXU.
    # TODO(synk): for large graphs replace the dense O(N^2) adjacency with a
    # scalar-prefetch-driven sparse segment-sum aggregation kernel.
    a_p = (jnp.zeros((n_pad, n_pad), jnp.float32)
           .at[edge_index[1], edge_index[0]].add(edge_weight)
           .astype(jnp.bfloat16))

    x_p = jnp.zeros((n_pad, din_pad), jnp.bfloat16).at[:n, :d_in].set(
        x.astype(jnp.bfloat16))
    w_p = jnp.zeros((din_pad, dout_pad), jnp.bfloat16).at[:d_in, :d_out].set(
        w.astype(jnp.bfloat16))
    b_p = jnp.zeros((1, dout_pad), jnp.float32).at[0, :d_out].set(b)

    # Edge endpoints as flat 1-D int32 (avoids the 2->8 SMEM sublane pad).
    src_p = jnp.zeros((e_pad,), jnp.int32).at[:e].set(edges[0].astype(jnp.int32))
    dst_p = jnp.zeros((e_pad,), jnp.int32).at[:e].set(edges[1].astype(jnp.int32))

    h = _gcn_layer(a_p, x_p, w_p, b_p, n_pad=n_pad, din_pad=din_pad,
                   dout_pad=dout_pad, d_in=d_in, d_out=d_out)  # (n_pad, dout_pad) bf16
    scores = _edge_head(src_p, dst_p, h, n_pad=n_pad, dout_pad=dout_pad,
                        e_pad=e_pad)
    return scores.reshape(-1)[:e]


def reference(x, edge_index, edge_weight, edges, w, b):
    n = x.shape[0]
    a = jnp.zeros((n, n), jnp.float32).at[edge_index[1], edge_index[0]].add(edge_weight)
    h = (a @ x) @ w + b
    return (h[edges[0]] * h[edges[1]]).sum(axis=-1)


if __name__ == "__main__":
    N, D_IN, D_OUT, M, E = 32, 16, 32, 64, 8

    key = jax.random.PRNGKey(0)
    k_x, k_ei, k_ew, k_e, k_w, k_b = jax.random.split(key, 6)

    x = jax.random.normal(k_x, (N, D_IN), dtype=jnp.float32)
    edge_index = jax.random.randint(k_ei, (2, M), 0, N, dtype=jnp.int32)
    edge_weight = jax.random.uniform(k_ew, (M,), dtype=jnp.float32)
    edges = jax.random.randint(k_e, (2, E), 0, N, dtype=jnp.int32)
    # Deterministic "model" parameters (single GCN layer).
    w = jax.random.normal(k_w, (D_IN, D_OUT), dtype=jnp.float32) * 0.1
    b = jax.random.normal(k_b, (D_OUT,), dtype=jnp.float32) * 0.1

    scores = link_predictor(x, edge_index, edge_weight, edges, w, b)
    jax.block_until_ready(scores)

    ref = reference(x, edge_index, edge_weight, edges, w, b)
    assert scores.shape == (E,)
    # bf16 MXU inputs + bf16 H (f32 accumulation) -> relaxed tolerance vs f32 ref.
    assert np.allclose(np.asarray(scores), np.asarray(ref), rtol=5e-2, atol=5e-2), (
        np.max(np.abs(np.asarray(scores) - np.asarray(ref))))

    print("KERNEL_OK")
</pallas_src>

<mosaic_0001>
module attributes {stable_mosaic.version = 11 : i64} {
  func.func @_gcn_kernel(%arg0: i32, %arg1: i32, %arg2: memref<64x128xbf16, #tpu.memory_space<vmem>>, %arg3: memref<128x128xbf16, #tpu.memory_space<vmem>>, %arg4: memref<128x128xbf16, #tpu.memory_space<vmem>>, %arg5: memref<1x128xf32, #tpu.memory_space<vmem>>, %arg6: memref<64x128xbf16, #tpu.memory_space<vmem>>, %arg7: memref<64x128xf32, #tpu.memory_space<vmem>>) attributes {dimension_semantics = [#tpu.dimension_semantics<parallel>, #tpu.dimension_semantics<arbitrary>], iteration_bounds = array<i64: 2, 1>, scalar_prefetch = 0 : i64, scratch_operands = 1 : i64, tpu.core_type = #tpu.core_type<tc>, window_params = [{transform_indices = @transform_0, window_bounds = array<i64: 64, 128>}, {transform_indices = @transform_1, window_bounds = array<i64: 128, 128>}, {pipeline_mode = #tpu.pipeline_mode<synchronous>, transform_indices = @transform_2, window_bounds = array<i64: 128, 128>}, {pipeline_mode = #tpu.pipeline_mode<synchronous>, transform_indices = @transform_3, window_bounds = array<i64: 1, 128>}, {transform_indices = @transform_4, window_bounds = array<i64: 64, 128>}]} {
    %c0_i32 = arith.constant 0 : i32
    %0 = arith.cmpi eq, %arg1, %c0_i32 : i32
    %1 = arith.extui %0 : i1 to i32
    %c0_i32_0 = arith.constant 0 : i32
    %2 = arith.cmpi ne, %1, %c0_i32_0 : i32
    scf.if %2 {
      %cst_10 = arith.constant 0.000000e+00 : f32
      %12 = vector.broadcast %cst_10 : f32 to vector<64x128xf32>
      %c0_11 = arith.constant 0 : index
      %c0_12 = arith.constant 0 : index
      %13 = vector.load %arg7[%c0_11, %c0_12] : memref<64x128xf32, #tpu.memory_space<vmem>>, vector<64x128xf32>
      tpu.vector_store %arg7[%c0_11, %c0_12], %12 {strides = array<i32>} : memref<64x128xf32, #tpu.memory_space<vmem>>, vector<64x128xf32>,
    } else {
    }
    %c0 = arith.constant 0 : index
    %c0_1 = arith.constant 0 : index
    %3 = vector.load %arg7[%c0, %c0_1] : memref<64x128xf32, #tpu.memory_space<vmem>>, vector<64x128xf32>
    %c0_2 = arith.constant 0 : index
    %c0_3 = arith.constant 0 : index
    %4 = vector.load %arg2[%c0_2, %c0_3] : memref<64x128xbf16, #tpu.memory_space<vmem>>, vector<64x128xbf16>
    %c0_4 = arith.constant 0 : index
    %c0_5 = arith.constant 0 : index
    %5 = vector.load %arg3[%c0_4, %c0_5] : memref<128x128xbf16, #tpu.memory_space<vmem>>, vector<128x128xbf16>
    %cst = arith.constant dense<0.000000e+00> : vector<64x128xf32>
    %6 = tpu.matmul %4, %5, %cst {dimension_numbers = #tpu.dot_dimension_numbers<[1], [0], [0], [1], [0, 0, 1, 1], [], []>} : vector<64x128xbf16>, vector<128x128xbf16>, vector<64x128xf32> -> vector<64x128xf32>
    %7 = arith.addf %3, %6 : vector<64x128xf32>
    %c0_6 = arith.constant 0 : index
    %c0_7 = arith.constant 0 : index
    %8 = vector.load %arg7[%c0_6, %c0_7] : memref<64x128xf32, #tpu.memory_space<vmem>>, vector<64x128xf32>
    tpu.vector_store %arg7[%c0_6, %c0_7], %7 {strides = array<i32>} : memref<64x128xf32, #tpu.memory_space<vmem>>, vector<64x128xf32>,
    %c0_i32_8 = arith.constant 0 : i32
    %9 = arith.cmpi eq, %arg1, %c0_i32_8 : i32
    %10 = arith.extui %9 : i1 to i32
    %c0_i32_9 = arith.constant 0 : i32
    %11 = arith.cmpi ne, %10, %c0_i32_9 : i32
    scf.if %11 {
      %c0_10 = arith.constant 0 : index
      %c0_11 = arith.constant 0 : index
      %12 = vector.load %arg7[%c0_10, %c0_11] : memref<64x128xf32, #tpu.memory_space<vmem>>, vector<64x128xf32>
      %13 = arith.truncf %12 : vector<64x128xf32> to vector<64x128xbf16>
      %c0_12 = arith.constant 0 : index
      %c0_13 = arith.constant 0 : index
      %14 = vector.load %arg4[%c0_12, %c0_13] : memref<128x128xbf16, #tpu.memory_space<vmem>>, vector<128x128xbf16>
      %cst_14 = arith.constant dense<0.000000e+00> : vector<64x128xf32>
      %15 = tpu.matmul %13, %14, %cst_14 {dimension_numbers = #tpu.dot_dimension_numbers<[1], [0], [0], [1], [0, 0, 1, 1], [], []>} : vector<64x128xbf16>, vector<128x128xbf16>, vector<64x128xf32> -> vector<64x128xf32>
      %c0_15 = arith.constant 0 : index
      %c0_16 = arith.constant 0 : index
      %16 = vector.load %arg5[%c0_15, %c0_16] : memref<1x128xf32, #tpu.memory_space<vmem>>, vector<1x128xf32>
      %17 = vector.broadcast %16 : vector<1x128xf32> to vector<64x128xf32>
      %18 = arith.addf %15, %17 : vector<64x128xf32>
      %19 = arith.truncf %18 : vector<64x128xf32> to vector<64x128xbf16>
      %c0_17 = arith.constant 0 : index
      %c0_18 = arith.constant 0 : index
      %20 = vector.load %arg6[%c0_17, %c0_18] : memref<64x128xbf16, #tpu.memory_space<vmem>>, vector<64x128xbf16>
      tpu.vector_store %arg6[%c0_17, %c0_18], %19 {strides = array<i32>} : memref<64x128xbf16, #tpu.memory_space<vmem>>, vector<64x128xbf16>,
    } else {
    }
    return
  }
  func.func @transform_0(%arg0: i32, %arg1: i32) -> (i32, i32) {
    %c0_i32 = arith.constant 0 : i32
    return %arg0, %arg1 : i32, i32
  }
  func.func @transform_1(%arg0: i32, %arg1: i32) -> (i32, i32) {
    %c0_i32 = arith.constant 0 : i32
    %c0_i32_0 = arith.constant 0 : i32
    return %arg1, %c0_i32 : i32, i32
  }
  func.func @transform_2(%arg0: i32, %arg1: i32) -> (i32, i32) {
    %c0_i32 = arith.constant 0 : i32
    %c0_i32_0 = arith.constant 0 : i32
    %c0_i32_1 = arith.constant 0 : i32
    return %c0_i32, %c0_i32_0 : i32, i32
  }
  func.func @transform_3(%arg0: i32, %arg1: i32) -> (i32, i32) {
    %c0_i32 = arith.constant 0 : i32
    %c0_i32_0 = arith.constant 0 : i32
    %c0_i32_1 = arith.constant 0 : i32
    return %c0_i32, %c0_i32_0 : i32, i32
  }
  func.func @transform_4(%arg0: i32, %arg1: i32) -> (i32, i32) {
    %c0_i32 = arith.constant 0 : i32
    %c0_i32_0 = arith.constant 0 : i32
    return %arg0, %c0_i32 : i32, i32
  }
}

</mosaic_0001>

<bundles_post_ra>
// kernel: tpu_custom_call.1
= control target key start
LH: loop header
LB: loop body
LE: loop exit
PB: predicated region body
PF: predicated region fallthrough
CT: control target
= control target key end

     0   :  { %9 = vsyncpa [#allocation4], 0  ;;  %s1522_s0 = inlined_call_operand.hbm [shape: bf16[128,128], index: 0, kind: input, shape index: {}]   ;;  %s1523_s1 = inlined_call_operand.hbm [shape: bf16[128,128], index: 1, kind: input, shape index: {}]   ;;  %s1524_s2 = inlined_call_operand.hbm [shape: bf16[128,128], index: 2, kind: input, shape index: {}]   ;;  %s1525_s3 = inlined_call_operand.vmem [shape: f32[1,128], index: 3, kind: input, shape index: {}]   ;;  %s1526_s4 = inlined_call_operand.hbm [shape: bf16[128,128], index: 4, kind: output, shape index: {}]  }
   0x1   :  { %11 = vsyncpa [#allocation4 + $0x1], 0 }
   0x2   :  { %12 = vsyncpa [#allocation7], 0 }
   0x3   :  { %13 = vsyncpa [#allocation5], 0 }
   0x4   :  { %15 = vsyncpa [#allocation5 + $0x1], 0  ;;  %s1245_s15 = smov 0   ;;  %s1247_s16 = smov 0  }
   0x5   :  { %s1249_s17 = smov 0   ;;  %s1251_s18 = smov 0  }
   0x6   :  { %s1253_s19 = smov 0   ;;  %s1255_s20 = smov 0  }
   0x7 LB: > { %s778_s21 = sadd.s32 4294967295, %s1210_s20   ;;  %s779_s22 = sadd.s32 4294967294, %s1210_s20   ;;  %s1210_s20 = sphi %s1255_s20, %s21_s20   ;;  %s1206_s19 = sphi %s1253_s19, %s1548_s19   ;;  %s1202_s18 = sphi %s1251_s18, %s1547_s18   ;;  %s1198_s17 = sphi %s1249_s17, %s1546_s17   ;;  %s1194_s16 = sphi %s1247_s16, %s1545_s16   ;;  %s1190_s15 = sphi %s1245_s15, %s1544_s15  }
   0x8   : > { %p55_p0 = scmp.ne.s32.totalorder %s1194_s16, %s1190_s15  ;;  %p1279_p1 = scmp.eq.s32.totalorder %s778_s21, 0 }
   0x9   : > { %p1283_p2 = scmp.eq.s32.totalorder %s778_s21, 1  ;;  %p153_p3 = scmp.eq.s32.totalorder %s779_s22, 1 }
   0xa   : > { %s1531_s23 = scalar_select %p1279_p1, 1, 0 }
   0xb   : > { %p1289_p4 = por %p1279_p1, %p55_p0  ;;  %p780_p5 = scmp.ge.s32.totalorder %s1210_s20, 1 }
   0xc   : > { %p1294_p6 = por %p153_p3, %p55_p0  ;;  %p160_p7 = scmp.lt.s32.totalorder %s1210_s20, 3 }
   0xd   : > { %s1533_s25 = scalar_select %p1289_p4, 1, 0 }
   0xe   : > { %s1534_s26 = scalar_select %p1294_p6, 1, 0 }
   0xf   : > { %p1299_p8 = pnand %p780_p5, %p160_p7  ;;  %s1212_s28 = smov [#allocation6]  }
  0x10   : > { %s175_s29 = sshll.u32 %s1212_s28, 4  ;;  %s1213_s5 = smov [#allocation8]   ;;  %s1303_s29 = int_to_ptr.vmem [resolvable:$true] %s175_s29 }
  0x11   : > { %p943_p9 = pneg %p1299_p8  ;;  %s188_s6 = sshll.u32 %s1213_s5, 4  ;;  %s1314_s6 = int_to_ptr.vmem [resolvable:$true] %s188_s6 }
  0x12   : > { %s1038_s9 = scalar_lea.hbm %s1523_s1, 1024 }
  0x13   : > { %p1310_p11 = pnand %p943_p9, %p1279_p1  ;;  %p1039_p12 = scmp.ne.s32.totalorder %s1523_s1, %s1038_s9 }
  0x14   : > { %p1045_p5 = scmp.lt.u32.totalorder %s1038_s9, %s1523_s1 }
  0x15   : > { %p1040_p13 = pneg %p1310_p11 }
  0x17   : > { %p1041_p0 = pnand %p1040_p13, %p1039_p12 }
  0x19   : > { %p1042_p3 = pneg %p1041_p0 }
  0x1b   : > { %p1047_p7 = pnand %p1045_p5, %p1042_p3 }
  0x1d   : > { %1050 = shalt.err (!%p1047_p7)
}
  0x1e   : > { %s1051_s14 = scalar_lea.vmem %s1303_s29, 1024  ;;  %p1059_p1 = scmp.lt.s32.totalorder %s1303_s29, %s1303_s29 }
  0x1f   : > { %p1052_p9 = scmp.ne.s32.totalorder %s1303_s29, %s1051_s14  ;;  %p1060_p12 = scmp.lt.s32.totalorder %s1051_s14, %s1051_s14 }
  0x21   : > { %p1054_p10 = pnand %p1052_p9, %p1040_p13  ;;  %p1061_p0 = por %p1060_p12, %p1059_p1 }
  0x23   : > { %p1055_p6 = pneg %p1054_p10 }
  0x25   : > { %p1062_p4 = pnand %p1061_p0, %p1055_p6 }
  0x27   : > { %1065 = shalt.err (!%p1062_p4)
}
  0x28   : > { %s1214_s21 = smov 64   ;;  %s1215_s22 = smov 4  }
  0x29   : > { %946 = dma.hbm_to_vmem [thread:$0]  (!%p1310_p11), %s1523_s1, 1024, %s1303_s29, [#allocation7], %s1214_s21, %s1214_s21, %s1215_s22  }
  0x2a   : > { %s1066_s9 = scalar_lea.hbm %s1524_s2, 1024 }
  0x2b   : > { %p1067_p1 = scmp.ne.s32.totalorder %s1524_s2, %s1066_s9  ;;  %p1073_p10 = scmp.lt.u32.totalorder %s1066_s9, %s1524_s2 }
  0x2d   : > { %p1069_p4 = pnand %p1067_p1, %p1040_p13 }
  0x2f   : > { %p1070_p6 = pneg %p1069_p4 }
  0x31   : > { %p1075_p3 = pnand %p1073_p10, %p1070_p6 }
  0x33   : > { %1078 = shalt.err (!%p1075_p3)
}
  0x34   : > { %s1079_s29 = scalar_lea.vmem %s1314_s6, 1024  ;;  %p1087_p12 = scmp.lt.s32.totalorder %s1314_s6, %s1314_s6 }
  0x35   : > { %p1080_p5 = scmp.ne.s32.totalorder %s1314_s6, %s1079_s29  ;;  %p1088_p0 = scmp.lt.s32.totalorder %s1079_s29, %s1079_s29 }
  0x37   : > { %p1082_p7 = pnand %p1080_p5, %p1040_p13  ;;  %p1089_p1 = por %p1088_p0, %p1087_p12 }
  0x39   : > { %p1083_p9 = pneg %p1082_p7 }
  0x3b   : > { %p1090_p4 = pnand %p1089_p1, %p1083_p9 }
  0x3d   : > { %1093 = shalt.err (!%p1090_p4)
}
  0x3e   : > { %949 = dma.hbm_to_vmem [thread:$0]  (!%p1310_p11), %s1524_s2, 1024, %s1314_s6, [#allocation7], %s1214_s21, %s1214_s21, %s1215_s22  }
  0x3f   : > { %s33_s30 = sadd.s32 1, %s1206_s19  ;;  %s42_s5 = sadd.s32 1, %s1198_s17 }
  0x40   : > { %p35_p13 = scmp.ge.s32.totalorder %s33_s30, 2  ;;  %p49_p6 = scmp.ne.s32.totalorder %s1198_s17, %s1194_s16 }
  0x41   : > { %p50_p10 = scmp.eq.s32.totalorder %s1210_s20, 0  ;;  %p960_p3 = scmp.lt.s32.totalorder %s1210_s20, 2 }
  0x42   : > { %s1550_s30 = smov (%p35_p13, %s33_s30), 0  ;;  %p1384_p7 = por %p1283_p2, %p49_p6 }
  0x43   : > { %p51_p5 = por %p50_p10, %p49_p6  ;;  %s37_s8 = ssub.s32 %s1206_s19, %s1550_s30 }
  0x44   : > { %s1537_s7 = scalar_select %p1384_p7, 1, 0 }
  0x45   : > { %s205_s9 = sand.u32 1, %s1198_s17   ;;  %p40_p9 = scmp.eq.s32.totalorder %s37_s8, 0 }
  0x46   : > { %s784_s6 = sshll.u32 %s205_s9, 5  ;;  %s826_s10 = sshll.u32 %s1206_s19, 9 }
  0x47   : > { %s1393_s11 = scalar_select %p40_p9, %s1198_s17, %s42_s5  }
  0x48   : > { %s1398_s29 = scalar_lea.hbm %s1522_s0, %s826_s10  ;;  %s209_s24 = scalar_lea.vmem [#allocation3], %s784_s6 }
  0x49   : > { %s217_s14 = sshll.u32 %s209_s24, 4  ;;  %p1402_p2 = pnand %p960_p3, %p51_p5  ;;  %s1406_s14 = int_to_ptr.vmem [resolvable:$true] %s217_s14 }
  0x4a   : > { %s1408_s5 = scalar_lea.sflag [#allocation4], %s205_s9  ;;  %s1094_s8 = scalar_lea.hbm %s1398_s29, 512 }
  0x4b   : > { %p1095_p11 = scmp.ne.s32.totalorder %s1398_s29, %s1094_s8  ;;  %p1096_p12 = pneg %p1402_p2 }
  0x4c   : > { %s1099_s12 = scalar_lea.hbm %s1522_s0, 1024  ;;  %p1100_p4 = scmp.lt.u32.totalorder %s1398_s29, %s1522_s0 }
  0x4d   : > { %p1097_p0 = pnand %p1096_p12, %p1095_p11  ;;  %p1101_p13 = scmp.lt.u32.totalorder %s1099_s12, %s1094_s8 }
  0x4e   : > { %p1103_p10 = scmp.lt.u32.totalorder %s1094_s8, %s1398_s29 }
  0x4f   : > { %p1098_p1 = pneg %p1097_p0  ;;  %p1102_p6 = por %p1101_p13, %p1100_p4 }
  0x51   : > { %p1104_p3 = por %p1103_p10, %p1102_p6 }
  0x53   : > { %p1105_p5 = pnand %p1104_p3, %p1098_p1 }
  0x55   : > { %1108 = shalt.err (!%p1105_p5)
}
  0x56   : > { %s1109_s9 = scalar_lea.vmem %s1406_s14, 512  ;;  %s1216_s6 = smov [#allocation3]  }
  0x57   : > { %p1110_p9 = scmp.ne.s32.totalorder %s1406_s14, %s1109_s9  ;;  %s1114_s10 = sshll.u32 %s1216_s6, 4  ;;  %s1115_s10 = int_to_ptr.vmem [resolvable:$false] %s1114_s10 }
  0x58   : > { %s1116_s13 = scalar_lea.vmem %s1115_s10, 1024  ;;  %p1117_p7 = scmp.lt.s32.totalorder %s1406_s14, %s1115_s10 }
  0x59   : > { %p1112_p11 = pnand %p1110_p9, %p1096_p12  ;;  %p1118_p4 = scmp.lt.s32.totalorder %s1116_s13, %s1109_s9 }
  0x5b   : > { %p1113_p0 = pneg %p1112_p11  ;;  %p1119_p13 = por %p1118_p4, %p1117_p7 }
  0x5d   : > { %p1120_p6 = pnand %p1119_p13, %p1113_p0 }
  0x5f   : > { %1123 = shalt.err (!%p1120_p6)
}
  0x60   : > { %953 = dma.hbm_to_vmem [thread:$0]  (!%p1402_p2), %s1398_s29, 512, %s1406_s14, %s1408_s5, %s1214_s21, %s1214_s21, %s1215_s22  }
  0x61   : > { %229 = sbr.rel (%p1299_p8) target bundleno = 601 (0x259), region = 36  ;;  %s1442_s8 = sand.u32 (!%p1299_p8), 1, %s1194_s16  }
  0x62   : > { %s788_s12 = sshll.u32 (!%p1299_p8), %s1442_s8, 5  ;;  %s232_s24 = scalar_lea.sflag (!%p1299_p8), [#allocation4], %s1442_s8 }
  0x63   : > { %s1448_s28 = scalar_lea.vmem (!%p1299_p8), [#allocation3], %s788_s12  ;;  %p1539_p7 = scmp.ne.s32.totalorder (!%p1299_p8), %s1533_s25, 0 }
  0x68   : > { %1177 = dma.done.wait (%p1539_p7), %s232_s24, 512  }
  0x69   : > { %1179 = vsyncadd (%p1539_p7), %s232_s24, 4294966784  ;;  %p1540_p2 = scmp.ne.s32.totalorder %s1531_s23, 0 }
  0x6b   : > { %1181 = dma.done.wait (%p1540_p2), [#allocation7], 2048  }
  0x6c   : > { %1183 = vsyncadd (%p1540_p2), [#allocation7], 4294965248  ;;  %v1018_v0 = vld [vmem:[#allocation6] sm:$0xff]   ;;  %v1019_v1 = vld [vmem:[#allocation6 + $0x8] sm:$0xff]   ;;  %s267_s27 = scalar_lea.vmem [#allocation9], %s788_s12  ;;  %s835_s22 = sshll.u32 %s1202_s18, 9 }
  0x6d   : > { %883 = vmatprep.subr.bf16.mxu0 %v1018_v0  ;;  %v1020_v2 = vld [vmem:[#allocation6 + $0x10] sm:$0xff]   ;;  %v1021_v3 = vld [vmem:[#allocation6 + $0x18] sm:$0xff]   ;;  %v1026_v4 = vld [vmem:[%s1448_s28] sm:$0xff]   ;;  %s674_s21 = sshll.u32 %s267_s27, 4  ;;  %s1473_s5 = scalar_lea.hbm %s1526_s4, %s835_s22  ;;  %s1468_s21 = int_to_ptr.vmem [resolvable:$true] %s674_s21 }
  0x6e   : > { %884 = vmatpush3.bf16.msra.mxu0 %v1018_v0  ;;  %899 = vmatprep.mubr.bf16.mxu0 %v1026_v4  ;;  %v1022_v5 = vld [vmem:[#allocation6 + $0x20] sm:$0xff]   ;;  %v1031_v7 = vld [vmem:[#allocation8 + $0x8] sm:$0xff]   ;;  %v1032_v9 = vld [vmem:[#allocation8 + $0x10] sm:$0xff]   ;;  %s661_s18 = scalar_lea.sflag [#allocation5], %s1442_s8  ;;  %s1124_s9 = scalar_lea.vmem %s1468_s21, 512 }
  0x6f   : > { %885 = vmatprep.subr.bf16.mxu0 %v1019_v1  ;;  %v1030_v6 = vld [vmem:[#allocation8] sm:$0xff]   ;;  %v1023_v8 = vld [vmem:[#allocation6 + $0x28] sm:$0xff]   ;;  %v1024_v10 = vld [vmem:[#allocation6 + $0x30] sm:$0xff]   ;;  %p1125_p8 = scmp.ne.s32.totalorder %s1468_s21, %s1124_s9  ;;  %p1541_p12 = scmp.ne.s32.totalorder %s1537_s7, 0 }
  0x70   : > { %907 = vmatprep.subr.bf16.mxu1 %v1030_v6  ;;  %v1033_v11 = vld [vmem:[#allocation8 + $0x18] sm:$0xff]   ;;  %v1034_v13 = vld [vmem:[#allocation8 + $0x20] sm:$0xff]   ;;  %v1035_v14 = vld [vmem:[#allocation8 + $0x28] sm:$0xff]   ;;  %s1217_s6 = smov [#allocation9]  }
  0x71   : > { %908 = vmatpush3.bf16.msra.mxu1 %v1030_v6  ;;  %v1025_v12 = vld [vmem:[#allocation6 + $0x38] sm:$0xff]   ;;  %v1027_v15 = vld [vmem:[%s1448_s28 + $0x8] sm:$0xff]   ;;  %v1028_v16 = vld [vmem:[%s1448_s28 + $0x10] sm:$0xff]   ;;  %p1126_p1 = pnand %p1125_p8, %p1541_p12  ;;  %s1128_s10 = sshll.u32 %s1217_s6, 4  ;;  %s1129_s10 = int_to_ptr.vmem [resolvable:$false] %s1128_s10 }
  0x72   : > { %886 = vmatpush3.bf16.msra.mxu0 %v1019_v1  ;;  %909 = vmatprep.subr.bf16.mxu1 %v1031_v7  ;;  %v1036_v17 = vld [vmem:[#allocation8 + $0x30] sm:$0xff]   ;;  %v1029_v18 = vld [vmem:[%s1448_s28 + $0x18] sm:$0xff]   ;;  %v804_v33 = vld [vmem:[%s1525_s3] ss:$0 sm:$0xff]  ;;  %s1130_s13 = scalar_lea.vmem %s1129_s10, 1024  ;;  %p1131_p3 = scmp.lt.s32.totalorder %s1468_s21, %s1129_s10 }
  0x73   : > { %887 = vmatprep.subr.bf16.mxu0 %v1020_v2  ;;  %v1037_v19 = vld [vmem:[#allocation8 + $0x38] sm:$0xff]   ;;  %p1127_p10 = pneg %p1126_p1  ;;  %p1132_p5 = scmp.lt.s32.totalorder %s1130_s13, %s1124_s9 }
  0x75   : > { %910 = vmatpush3.bf16.msra.mxu1 %v1031_v7  ;;  %p1133_p9 = por %p1132_p5, %p1131_p3 }
  0x76   : > { %888 = vmatpush3.bf16.msra.mxu0 %v1020_v2  ;;  %911 = vmatprep.subr.bf16.mxu1 %v1032_v9 }
  0x77   : > { %889 = vmatprep.subr.bf16.mxu0 %v1021_v3  ;;  %p1134_p11 = pnand %p1133_p9, %p1127_p10 }
  0x79   : > { %912 = vmatpush3.bf16.msra.mxu1 %v1032_v9 }
  0x7a   : > { %890 = vmatpush3.bf16.msra.mxu0 %v1021_v3  ;;  %913 = vmatprep.subr.bf16.mxu1 %v1033_v11 }
  0x7b   : > { %891 = vmatprep.subr.bf16.mxu0 %v1022_v5 }
  0x7d   : > { %914 = vmatpush3.bf16.msra.mxu1 %v1033_v11 }
  0x7e   : > { %892 = vmatpush3.bf16.msra.mxu0 %v1022_v5  ;;  %915 = vmatprep.subr.bf16.mxu1 %v1034_v13 }
  0x7f   : > { %893 = vmatprep.subr.bf16.mxu0 %v1023_v8 }
  0x81   : > { %916 = vmatpush3.bf16.msra.mxu1 %v1034_v13 }
  0x82   : > { %894 = vmatpush3.bf16.msra.mxu0 %v1023_v8  ;;  %917 = vmatprep.subr.bf16.mxu1 %v1035_v14 }
  0x83   : > { %895 = vmatprep.subr.bf16.mxu0 %v1024_v10 }
  0x85   : > { %918 = vmatpush3.bf16.msra.mxu1 %v1035_v14 }
  0x86   : > { %896 = vmatpush3.bf16.msra.mxu0 %v1024_v10  ;;  %919 = vmatprep.subr.bf16.mxu1 %v1036_v17 }
  0x87   : > { %897 = vmatprep.subr.bf16.mxu0 %v1025_v12 }
  0x89   : > { %920 = vmatpush3.bf16.msra.mxu1 %v1036_v17 }
  0x8a   : > { %898 = vmatpush3.bf16.msra.mxu0 %v1025_v12  ;;  %921 = vmatprep.subr.bf16.mxu1 %v1037_v19 }
  0x8d   : > { %900 = vmatmul.mubr.bf16.vlgmr.msra.gmra.mrb[0].mxu0 %v1027_v15  ;;  %922 = vmatpush3.bf16.msra.mxu1 %v1037_v19 }
  0x8e   : > { %903 = vmatprep.mubr.bf16.mxu0 %v1028_v16 }
  0x95   : > { %904 = vmatmul.mubr.bf16.gmra.mrb[4].mxu0 %v1029_v18 }
 0x160   : > { %v901_v20 = vpop.f32.mrb[0].mxu0 }
 0x161   : > { %v422_v21 = vpop.f32.mrb[1].mxu0 }
 0x162   : > { %v902_v22 = vpop.f32.mrb[2].mxu0 }
 0x163   : > { %v481_v23 = vpack.c.bf16 %v902_v22, %v901_v20  ;;  %v425_v24 = vpop.f32.mrb[3].mxu0 }
 0x164   : > { %v480_v25 = vpack.c.bf16 %v425_v24, %v422_v21 }
 0x166   : > { %923 = vmatprep.mubr.bf16.mxu1 %v480_v25 }
 0x167   : > { %924 = vmatmul.mubr.bf16.vlgmr.msra.gmra.mrb[0].mxu1 %v481_v23 }
 0x168   : > { %v905_v26 = vpop.f32.mrb[4].mxu0 }
 0x169   : > { %v438_v27 = vpop.f32.mrb[5].mxu0 }
 0x16a   : > { %v906_v28 = vpop.f32.mrb[6].mxu0 }
 0x16b   : > { %v483_v29 = vpack.c.bf16 %v906_v28, %v905_v26  ;;  %v441_v30 = vpop.f32.mrb[7].mxu0 }
 0x16c   : > { %v482_v31 = vpack.c.bf16 %v441_v30, %v438_v27 }
 0x16e   : > { %927 = vmatprep.mubr.bf16.mxu1 %v482_v31 }
 0x16f   : > { %928 = vmatmul.mubr.bf16.gmra.mrb[4].mxu1 %v483_v29 }
 0x23a   : > { %v925_v32 = vpop.f32.mrb[0].mxu1 }
 0x23b   : > { %v589_v34 = vpop.f32.mrb[1].mxu1  ;;  %v598_v36 = vadd.f32 %v925_v32, %v804_v33 }
 0x23c   : > { %v926_v35 = vpop.f32.mrb[2].mxu1  ;;  %v590_v39 = vadd.f32 %v804_v33, %v589_v34 }
 0x23d   : > { %v601_v37 = vadd.f32 %v926_v35, %v804_v33  ;;  %v592_v38 = vpop.f32.mrb[3].mxu1 }
 0x23e   : > { %v593_v40 = vadd.f32 %v804_v33, %v592_v38 }
 0x23f   : > { %v844_v41 = vpack.c.bf16 %v601_v37, %v598_v36 }
 0x240   : > { %v839_v42 = vpack.c.bf16 %v593_v40, %v590_v39 }
 0x241   : > { %856 = vst [vmem:[%s267_s27 + $0x8] sm:$0xff] %v844_v41  }
 0x242   : > { %840 = vst [vmem:[%s267_s27] sm:$0xff] %v839_v42   ;;  %v929_v43 = vpop.f32.mrb[4].mxu1 }
 0x243   : > { %v605_v44 = vpop.f32.mrb[5].mxu1  ;;  %v614_v46 = vadd.f32 %v929_v43, %v804_v33 }
 0x244   : > { %v930_v45 = vpop.f32.mrb[6].mxu1  ;;  %v606_v49 = vadd.f32 %v804_v33, %v605_v44 }
 0x245   : > { %v617_v47 = vadd.f32 %v930_v45, %v804_v33  ;;  %v608_v48 = vpop.f32.mrb[7].mxu1 }
 0x246   : > { %v609_v50 = vadd.f32 %v804_v33, %v608_v48 }
 0x247   : > { %v854_v51 = vpack.c.bf16 %v617_v47, %v614_v46 }
 0x248   : > { %v849_v52 = vpack.c.bf16 %v609_v50, %v606_v49 }
 0x249   : > { %858 = vst [vmem:[%s267_s27 + $0x18] sm:$0xff] %v854_v51  }
 0x24a   : > { %857 = vst [vmem:[%s267_s27 + $0x10] sm:$0xff] %v849_v52  }
 0x24b   : > { %1137 = shalt.err (!%p1134_p11)
}
 0x24c   : > { %s1138_s12 = scalar_lea.hbm %s1473_s5, 512  ;;  %s1142_s23 = scalar_lea.hbm %s1526_s4, 1024 }
 0x24d   : > { %p1139_p0 = scmp.ne.s32.totalorder %s1473_s5, %s1138_s12  ;;  %p1143_p6 = scmp.lt.u32.totalorder %s1473_s5, %s1526_s4 }
 0x24e   : > { %p1144_p7 = scmp.lt.u32.totalorder %s1142_s23, %s1138_s12  ;;  %p1146_p8 = scmp.lt.u32.totalorder %s1138_s12, %s1473_s5 }
 0x24f   : > { %p1140_p4 = pnand %p1139_p0, %p1541_p12 }
 0x250   : > { %p1145_p2 = por %p1144_p7, %p1143_p6 }
 0x251   : > { %p1141_p13 = pneg %p1140_p4 }
 0x252   : > { %p1147_p1 = por %p1146_p8, %p1145_p2 }
 0x254   : > { %p1148_p10 = pnand %p1147_p1, %p1141_p13 }
 0x256   : > { %1151 = shalt.err (!%p1148_p10)
}
 0x257   : > { %s1218_s22 = smov 64   ;;  %s1219_s29 = smov 4  }
 0x258   : > { %941 = dma.vmem_to_hbm [thread:$0]  (%p1541_p12), %s1468_s21, 512, %s1473_s5, %s661_s18, %s1218_s22, %s1218_s22, %s1219_s29  }
 0x259 PF: > { %s689_s14 = sand.u32 1, %s1190_s15   ;;  %p1542_p3 = scmp.ne.s32.totalorder %s1534_s26, 0 }
 0x25a   : > { %p1543_p5 = scmp.ge.s32.totalorder %s1210_s20, 2  ;;  %s690_s9 = scalar_lea.sflag [#allocation5], %s689_s14 }
 0x25c   : > { %p955_p9 = pnand %p1543_p5, %p1542_p3 }
 0x25e   : > { %1185 = dma.done.wait (!%p955_p9), %s690_s9, 512  }
 0x25f   : > { %1187 = vsyncadd (!%p955_p9), %s690_s9, 4294966784  ;;  %s21_s20 = sadd.s32 1, %s1210_s20   ;;  %s1544_s15 = smov %s1194_s16 }
 0x260   : > { %p18_p11 = scmp.ge.s32.totalorder %s21_s20, 4   ;;  %s1545_s16 = smov %s1198_s17 }
 0x261   : > { %s1546_s17 = smov %s1393_s11  ;;  %s1547_s18 = smov %s1206_s19 }
 0x262   : > { %s1548_s19 = smov %s1550_s30  ;;  %20 = sbr.rel (!%p18_p11) target bundleno = 7 (0x7), region = 98 }
 0x269   :  { %695 = vsyncpa [#allocation4], 1 }
 0x26a   :  { %697 = vsyncpa [#allocation4 + $0x1], 1 }
 0x26b   :  { %698 = vsyncpa [#allocation7], 1 }
 0x26c   :  { %699 = vsyncpa [#allocation5], 1 }
 0x26d   :  { %701 = vsyncpa [#allocation5 + $0x1], 1 }

</bundles_post_ra>
